<compile_context>
chip_gen: v7x
topology: tpu7x:2x2x1
jax: 0.10.0
libtpu: 0.0.40
codegen_flags: <defaults>
</compile_context>

<pallas_src>
import functools

import jax
import jax.numpy as jnp
from jax.experimental import pallas as pl
from jax.experimental.pallas import tpu as pltpu


# ----------------------------------------------------------------------------
# Fused kernel: one grid step per Bt-sized batch tile.
#   x_ref : (Bt, Cx, H*W)  f32      f_ref : (Bt, Cf, H*W)  f32
#   m_ref : (9, H*W)       f32      w_ref : (Cout, 9*Cin)  bf16
#   b_ref : (Cout, 1)      f32      o_ref : (Bt, Cout, H*W) f32
# ----------------------------------------------------------------------------
def _aisl_kernel(x_ref, f_ref, m_ref, w_ref, b_ref, o_ref, *,
                 H, W, Cx, Cf, Cout, Bt, e_lambda):
    HW = H * W
    x = x_ref[...]                                   # (Bt, Cx, HW) f32
    fp = f_ref[...]                                  # (Bt, Cf, HW) f32
    masks = m_ref[...]                               # (9, HW) f32

    # ---- SimAM on x (f32 VPU/EUP path; vectorized over the batch tile) ----
    n = float(HW - 1)
    mu = jnp.mean(x, axis=2, keepdims=True)
    d = (x - mu) ** 2
    s = jnp.sum(d, axis=2, keepdims=True)
    y = d / (4.0 * (s / n + e_lambda)) + 0.5
    x_an = x * jax.nn.sigmoid(y)

    # ---- channel concat entirely on-chip (never touches HBM) ----
    cat = jnp.concatenate([x_an, fp], axis=1)        # (Bt, Cin, HW) f32

    # ---- im2col via lane-rolls + precomputed border masks ------------------
    # Build a (9*Cin, Bt*HW) RHS: tap-major / channel-minor rows, batches
    # lane-concatenated along the columns.
    cols = []
    for b in range(Bt):
        cat_b = cat[b]                               # (Cin, HW)
        taps = []
        t = 0
        for ky in range(3):
            for kx in range(3):
                dy, dx = ky - 1, kx - 1
                off = dy * W + dx                    # flat spatial shift
                if off == 0:
                    taps.append(cat_b)
                else:
                    shifted = pltpu.roll(cat_b, (-off) % HW, 1)
                    taps.append(shifted * masks[t:t + 1, :])
                t += 1
        cols.append(jnp.concatenate(taps, axis=0))   # (9*Cin, HW)
    rhs = jnp.concatenate(cols, axis=1).astype(jnp.bfloat16)  # (9*Cin, Bt*HW)

    # ---- single wide MXU matmul (bf16 operands, f32 accumulate) + bias ----
    out = jnp.dot(w_ref[...], rhs, preferred_element_type=jnp.float32)
    out = out + b_ref[...]                           # (Cout, Bt*HW) f32

    for b in range(Bt):
        o_ref[b] = out[:, b * HW:(b + 1) * HW].astype(o_ref.dtype)


def aisl_forward(x, f, weight, bias, e_lambda):
    """x: (B, Cx, H, W); f: (B, Cf, H, W); weight: (Cout, Cx+Cf, 3, 3)."""
    B, Cx, H, W = x.shape
    Cf = f.shape[1]
    Cout = weight.shape[0]
    Cin = Cx + Cf
    HW = H * W

    # Fold as many batch elements per grid step as evenly divide B (cap at 8
    # so the per-step VMEM stays small; each extra batch adds ~9*Cin*HW f32).
    Bt = 1
    for cand in (8, 4, 2, 1):
        if B % cand == 0:
            Bt = cand
            break
    n_steps = B // Bt

    # Free views: NCHW -> (B, C, H*W) is a trailing-dim collapse (no copy).
    x3 = x.reshape(B, Cx, HW)
    f3 = f.reshape(B, Cf, HW)
    # (Cout, Cin, 3, 3) -> (Cout, 3, 3, Cin) -> (Cout, 9*Cin): tap-major /
    # channel-minor, matching the in-kernel im2col row order.  bf16 for MXU.
    wmat = jnp.transpose(weight, (0, 2, 3, 1)).reshape(Cout, 9 * Cin)
    wmat = wmat.astype(jnp.bfloat16)
    bias2 = bias.reshape(Cout, 1).astype(jnp.float32)

    # Precompute border masks once (9, HW): 1 where the shifted tap is valid.
    pos = jnp.arange(HW, dtype=jnp.int32)
    row = pos // W
    col = pos % W
    mask_rows = []
    for ky in range(3):
        for kx in range(3):
            dy, dx = ky - 1, kx - 1
            m = jnp.ones((HW,), jnp.float32)
            if dy != 0:
                m = m * ((row + dy >= 0) & (row + dy <= H - 1)).astype(jnp.float32)
            if dx != 0:
                m = m * ((col + dx >= 0) & (col + dx <= W - 1)).astype(jnp.float32)
            mask_rows.append(m)
    masks = jnp.stack(mask_rows, axis=0)             # (9, HW) f32

    cost = pl.CostEstimate(
        flops=2 * B * Cout * 9 * Cin * HW + 10 * B * Cx * HW,
        transcendentals=B * Cx * HW,
        bytes_accessed=(4 * B * (Cx + Cf + Cout) * HW
                        + 2 * Cout * 9 * Cin + 4 * Cout + 4 * 9 * HW),
    )

    out = pl.pallas_call(
        functools.partial(_aisl_kernel, H=H, W=W, Cx=Cx, Cf=Cf,
                          Cout=Cout, Bt=Bt, e_lambda=float(e_lambda)),
        out_shape=jax.ShapeDtypeStruct((B, Cout, HW), jnp.float32),
        grid_spec=pltpu.PrefetchScalarGridSpec(
            num_scalar_prefetch=0,
            grid=(n_steps,),
            in_specs=[
                pl.BlockSpec((Bt, Cx, HW), lambda g: (g, 0, 0)),
                pl.BlockSpec((Bt, Cf, HW), lambda g: (g, 0, 0)),
                pl.BlockSpec((9, HW), lambda g: (0, 0)),
                pl.BlockSpec((Cout, 9 * Cin), lambda g: (0, 0)),
                pl.BlockSpec((Cout, 1), lambda g: (0, 0)),
            ],
            out_specs=pl.BlockSpec((Bt, Cout, HW), lambda g: (g, 0, 0)),
        ),
        compiler_params=pltpu.CompilerParams(
            dimension_semantics=("parallel",)),
        cost_estimate=cost,
    )(x3, f3, masks, wmat, bias2)

    # Output already has NCHW memory order; reshape back is free.
    return out.reshape(B, Cout, H, W)


# ----------------------------------------------------------------------------
# AISL module
# ----------------------------------------------------------------------------
class AISL:
    def __init__(self, in_ch, out_ch, key):
        # Reproduce PyTorch bug-for-bug: Simam_module(out_ch) -> e_lambda = out_ch.
        self.e_lambda = float(out_ch)
        kw, kb = jax.random.split(key)
        fan_in = in_ch * 3 * 3
        bound = 1.0 / (fan_in ** 0.5)
        # Deterministic synthetic init (kaiming-uniform-like bounds).
        self.weight = jax.random.uniform(
            kw, (out_ch, in_ch, 3, 3), jnp.float32, -bound, bound)
        self.bias = jax.random.uniform(
            kb, (out_ch,), jnp.float32, -bound, bound)

    def __call__(self, x, f):
        return aisl_forward(x, f, self.weight, self.bias, self.e_lambda)


# ----------------------------------------------------------------------------
# Pure-JAX reference for verification.
# ----------------------------------------------------------------------------
def _reference(x, f, weight, bias, e_lambda):
    b, c, h, w = x.shape
    n = h * w - 1
    mu = jnp.mean(x, axis=(2, 3), keepdims=True)
    d = (x - mu) ** 2
    y = d / (4.0 * (jnp.sum(d, axis=(2, 3), keepdims=True) / n + e_lambda)) + 0.5
    x_an = x * jax.nn.sigmoid(y)
    cat = jnp.concatenate([x_an, f], axis=1)
    out = jax.lax.conv_general_dilated(
        cat, weight, window_strides=(1, 1), padding=((1, 1), (1, 1)),
        dimension_numbers=("NCHW", "OIHW", "NCHW"))
    return out + bias[None, :, None, None]


if __name__ == "__main__":
    key = jax.random.PRNGKey(0)
    kx, kf, kp = jax.random.split(key, 3)

    B, Cx, Cf, H, W = 2, 4, 4, 16, 16
    in_ch, out_ch = Cx + Cf, 8

    x = jax.random.normal(kx, (B, Cx, H, W), jnp.float32)
    f = jax.random.normal(kf, (B, Cf, H, W), jnp.float32)

    model = AISL(in_ch, out_ch, kp)
    out = model(x, f)
    out = jax.block_until_ready(out)

    ref = _reference(x, f, model.weight, model.bias, model.e_lambda)
    assert out.shape == (B, out_ch, H, W)
    # Tolerance loosened vs. the pure-f32 version: matmul operands are bf16
    # (SimAM math and the accumulate stay f32).
    assert jnp.allclose(out, ref, atol=3e-2, rtol=3e-2), "mismatch vs reference"

    print("KERNEL_OK")
</pallas_src>

<mosaic_0001>
module attributes {stable_mosaic.version = 11 : i64} {
  func.func @_aisl_kernel(%arg0: i32, %arg1: memref<2x4x256xf32, #tpu.memory_space<vmem>>, %arg2: memref<2x4x256xf32, #tpu.memory_space<vmem>>, %arg3: memref<9x256xf32, #tpu.memory_space<vmem>>, %arg4: memref<8x72xbf16, #tpu.memory_space<vmem>>, %arg5: memref<8x1xf32, #tpu.memory_space<vmem>>, %arg6: memref<2x8x256xf32, #tpu.memory_space<vmem>>) attributes {dimension_semantics = [#tpu.dimension_semantics<parallel>], iteration_bounds = array<i64: 1>, scalar_prefetch = 0 : i64, scratch_operands = 0 : i64, tpu.core_type = #tpu.core_type<tc>, window_params = [{transform_indices = @transform_0, window_bounds = array<i64: 2, 4, 256>}, {transform_indices = @transform_1, window_bounds = array<i64: 2, 4, 256>}, {pipeline_mode = #tpu.pipeline_mode<synchronous>, transform_indices = @transform_2, window_bounds = array<i64: 9, 256>}, {pipeline_mode = #tpu.pipeline_mode<synchronous>, transform_indices = @transform_3, window_bounds = array<i64: 8, 72>}, {pipeline_mode = #tpu.pipeline_mode<synchronous>, transform_indices = @transform_4, window_bounds = array<i64: 8, 1>}, {transform_indices = @transform_5, window_bounds = array<i64: 2, 8, 256>}]} {
    %c0 = arith.constant 0 : index
    %c0_0 = arith.constant 0 : index
    %c0_1 = arith.constant 0 : index
    %0 = vector.load %arg1[%c0, %c0_0, %c0_1] : memref<2x4x256xf32, #tpu.memory_space<vmem>>, vector<2x4x256xf32>
    %c0_2 = arith.constant 0 : index
    %c0_3 = arith.constant 0 : index
    %c0_4 = arith.constant 0 : index
    %1 = vector.load %arg2[%c0_2, %c0_3, %c0_4] : memref<2x4x256xf32, #tpu.memory_space<vmem>>, vector<2x4x256xf32>
    %c0_5 = arith.constant 0 : index
    %c0_6 = arith.constant 0 : index
    %2 = vector.load %arg3[%c0_5, %c0_6] : memref<9x256xf32, #tpu.memory_space<vmem>>, vector<9x256xf32>
    %cst = arith.constant dense<0.000000e+00> : vector<2x4xf32>
    %3 = vector.multi_reduction <add>, %0, %cst [2] : vector<2x4x256xf32> to vector<2x4xf32>
    %4 = vector.shape_cast %3 : vector<2x4xf32> to vector<2x4x1xf32>
    %cst_7 = arith.constant 2.560000e+02 : f32
    %5 = vector.broadcast %cst_7 : f32 to vector<2x4x1xf32>
    %6 = arith.divf %4, %5 : vector<2x4x1xf32>
    %7 = vector.broadcast %6 : vector<2x4x1xf32> to vector<2x4x256xf32>
    %8 = arith.subf %0, %7 : vector<2x4x256xf32>
    %9 = arith.mulf %8, %8 : vector<2x4x256xf32>
    %cst_8 = arith.constant dense<0.000000e+00> : vector<2x4xf32>
    %10 = vector.multi_reduction <add>, %9, %cst_8 [2] : vector<2x4x256xf32> to vector<2x4xf32>
    %11 = vector.shape_cast %10 : vector<2x4xf32> to vector<2x4x1xf32>
    %cst_9 = arith.constant 2.550000e+02 : f32
    %12 = vector.broadcast %cst_9 : f32 to vector<2x4x1xf32>
    %13 = arith.divf %11, %12 : vector<2x4x1xf32>
    %cst_10 = arith.constant 8.000000e+00 : f32
    %14 = vector.broadcast %cst_10 : f32 to vector<2x4x1xf32>
    %15 = arith.addf %13, %14 : vector<2x4x1xf32>
    %cst_11 = arith.constant 4.000000e+00 : f32
    %16 = vector.broadcast %cst_11 : f32 to vector<2x4x1xf32>
    %17 = arith.mulf %16, %15 : vector<2x4x1xf32>
    %18 = vector.broadcast %17 : vector<2x4x1xf32> to vector<2x4x256xf32>
    %19 = arith.divf %9, %18 : vector<2x4x256xf32>
    %cst_12 = arith.constant 5.000000e-01 : f32
    %20 = vector.broadcast %cst_12 : f32 to vector<2x4x256xf32>
    %21 = arith.addf %19, %20 : vector<2x4x256xf32>
    %22 = arith.negf %21 : vector<2x4x256xf32>
    %23 = math.exp %22 : vector<2x4x256xf32>
    %cst_13 = arith.constant 1.000000e+00 : f32
    %24 = vector.broadcast %cst_13 : f32 to vector<2x4x256xf32>
    %25 = arith.addf %24, %23 : vector<2x4x256xf32>
    %26 = arith.divf %24, %25 : vector<2x4x256xf32>
    %27 = arith.mulf %0, %26 : vector<2x4x256xf32>
    %28 = tpu.concatenate %27, %1 in 1 : vector<2x4x256xf32>, vector<2x4x256xf32> -> vector<2x8x256xf32>
    %29 = vector.extract_strided_slice %28 {offsets = [0, 0, 0], sizes = [1, 8, 256], strides = [1, 1, 1]} : vector<2x8x256xf32> to vector<1x8x256xf32>
    %30 = vector.shape_cast %29 : vector<1x8x256xf32> to vector<8x256xf32>
    %c17_i32 = arith.constant 17 : i32
    %31 = tpu.dynamic_rotate %30 by %c17_i32 dim 1 : vector<8x256xf32>, i32 -> vector<8x256xf32>
    %32 = vector.extract_strided_slice %2 {offsets = [0, 0], sizes = [1, 256], strides = [1, 1]} : vector<9x256xf32> to vector<1x256xf32>
    %33 = vector.broadcast %32 : vector<1x256xf32> to vector<8x256xf32>
    %34 = arith.mulf %31, %33 : vector<8x256xf32>
    %c16_i32 = arith.constant 16 : i32
    %35 = tpu.dynamic_rotate %30 by %c16_i32 dim 1 : vector<8x256xf32>, i32 -> vector<8x256xf32>
    %36 = vector.extract_strided_slice %2 {offsets = [1, 0], sizes = [1, 256], strides = [1, 1]} : vector<9x256xf32> to vector<1x256xf32>
    %37 = vector.broadcast %36 : vector<1x256xf32> to vector<8x256xf32>
    %38 = arith.mulf %35, %37 : vector<8x256xf32>
    %c15_i32 = arith.constant 15 : i32
    %39 = tpu.dynamic_rotate %30 by %c15_i32 dim 1 : vector<8x256xf32>, i32 -> vector<8x256xf32>
    %40 = vector.extract_strided_slice %2 {offsets = [2, 0], sizes = [1, 256], strides = [1, 1]} : vector<9x256xf32> to vector<1x256xf32>
    %41 = vector.broadcast %40 : vector<1x256xf32> to vector<8x256xf32>
    %42 = arith.mulf %39, %41 : vector<8x256xf32>
    %c1_i32 = arith.constant 1 : i32
    %43 = tpu.dynamic_rotate %30 by %c1_i32 dim 1 : vector<8x256xf32>, i32 -> vector<8x256xf32>
    %44 = vector.extract_strided_slice %2 {offsets = [3, 0], sizes = [1, 256], strides = [1, 1]} : vector<9x256xf32> to vector<1x256xf32>
    %45 = vector.broadcast %44 : vector<1x256xf32> to vector<8x256xf32>
    %46 = arith.mulf %43, %45 : vector<8x256xf32>
    %c255_i32 = arith.constant 255 : i32
    %47 = tpu.dynamic_rotate %30 by %c255_i32 dim 1 : vector<8x256xf32>, i32 -> vector<8x256xf32>
    %48 = vector.extract_strided_slice %2 {offsets = [5, 0], sizes = [1, 256], strides = [1, 1]} : vector<9x256xf32> to vector<1x256xf32>
    %49 = vector.broadcast %48 : vector<1x256xf32> to vector<8x256xf32>
    %50 = arith.mulf %47, %49 : vector<8x256xf32>
    %c241_i32 = arith.constant 241 : i32
    %51 = tpu.dynamic_rotate %30 by %c241_i32 dim 1 : vector<8x256xf32>, i32 -> vector<8x256xf32>
    %52 = vector.extract_strided_slice %2 {offsets = [6, 0], sizes = [1, 256], strides = [1, 1]} : vector<9x256xf32> to vector<1x256xf32>
    %53 = vector.broadcast %52 : vector<1x256xf32> to vector<8x256xf32>
    %54 = arith.mulf %51, %53 : vector<8x256xf32>
    %c240_i32 = arith.constant 240 : i32
    %55 = tpu.dynamic_rotate %30 by %c240_i32 dim 1 : vector<8x256xf32>, i32 -> vector<8x256xf32>
    %56 = vector.extract_strided_slice %2 {offsets = [7, 0], sizes = [1, 256], strides = [1, 1]} : vector<9x256xf32> to vector<1x256xf32>
    %57 = vector.broadcast %56 : vector<1x256xf32> to vector<8x256xf32>
    %58 = arith.mulf %55, %57 : vector<8x256xf32>
    %c239_i32 = arith.constant 239 : i32
    %59 = tpu.dynamic_rotate %30 by %c239_i32 dim 1 : vector<8x256xf32>, i32 -> vector<8x256xf32>
    %60 = vector.extract_strided_slice %2 {offsets = [8, 0], sizes = [1, 256], strides = [1, 1]} : vector<9x256xf32> to vector<1x256xf32>
    %61 = vector.broadcast %60 : vector<1x256xf32> to vector<8x256xf32>
    %62 = arith.mulf %59, %61 : vector<8x256xf32>
    %63 = tpu.concatenate %34, %38, %42, %46, %30, %50, %54, %58, %62 in 0 : vector<8x256xf32>, vector<8x256xf32>, vector<8x256xf32>, vector<8x256xf32>, vector<8x256xf32>, vector<8x256xf32>, vector<8x256xf32>, vector<8x256xf32>, vector<8x256xf32> -> vector<72x256xf32>
    %64 = vector.extract_strided_slice %28 {offsets = [1, 0, 0], sizes = [1, 8, 256], strides = [1, 1, 1]} : vector<2x8x256xf32> to vector<1x8x256xf32>
    %65 = vector.shape_cast %64 : vector<1x8x256xf32> to vector<8x256xf32>
    %c17_i32_14 = arith.constant 17 : i32
    %66 = tpu.dynamic_rotate %65 by %c17_i32_14 dim 1 : vector<8x256xf32>, i32 -> vector<8x256xf32>
    %67 = vector.extract_strided_slice %2 {offsets = [0, 0], sizes = [1, 256], strides = [1, 1]} : vector<9x256xf32> to vector<1x256xf32>
    %68 = vector.broadcast %67 : vector<1x256xf32> to vector<8x256xf32>
    %69 = arith.mulf %66, %68 : vector<8x256xf32>
    %c16_i32_15 = arith.constant 16 : i32
    %70 = tpu.dynamic_rotate %65 by %c16_i32_15 dim 1 : vector<8x256xf32>, i32 -> vector<8x256xf32>
    %71 = vector.extract_strided_slice %2 {offsets = [1, 0], sizes = [1, 256], strides = [1, 1]} : vector<9x256xf32> to vector<1x256xf32>
    %72 = vector.broadcast %71 : vector<1x256xf32> to vector<8x256xf32>
    %73 = arith.mulf %70, %72 : vector<8x256xf32>
    %c15_i32_16 = arith.constant 15 : i32
    %74 = tpu.dynamic_rotate %65 by %c15_i32_16 dim 1 : vector<8x256xf32>, i32 -> vector<8x256xf32>
    %75 = vector.extract_strided_slice %2 {offsets = [2, 0], sizes = [1, 256], strides = [1, 1]} : vector<9x256xf32> to vector<1x256xf32>
    %76 = vector.broadcast %75 : vector<1x256xf32> to vector<8x256xf32>
    %77 = arith.mulf %74, %76 : vector<8x256xf32>
    %c1_i32_17 = arith.constant 1 : i32
    %78 = tpu.dynamic_rotate %65 by %c1_i32_17 dim 1 : vector<8x256xf32>, i32 -> vector<8x256xf32>
    %79 = vector.extract_strided_slice %2 {offsets = [3, 0], sizes = [1, 256], strides = [1, 1]} : vector<9x256xf32> to vector<1x256xf32>
    %80 = vector.broadcast %79 : vector<1x256xf32> to vector<8x256xf32>
    %81 = arith.mulf %78, %80 : vector<8x256xf32>
    %c255_i32_18 = arith.constant 255 : i32
    %82 = tpu.dynamic_rotate %65 by %c255_i32_18 dim 1 : vector<8x256xf32>, i32 -> vector<8x256xf32>
    %83 = vector.extract_strided_slice %2 {offsets = [5, 0], sizes = [1, 256], strides = [1, 1]} : vector<9x256xf32> to vector<1x256xf32>
    %84 = vector.broadcast %83 : vector<1x256xf32> to vector<8x256xf32>
    %85 = arith.mulf %82, %84 : vector<8x256xf32>
    %c241_i32_19 = arith.constant 241 : i32
    %86 = tpu.dynamic_rotate %65 by %c241_i32_19 dim 1 : vector<8x256xf32>, i32 -> vector<8x256xf32>
    %87 = vector.extract_strided_slice %2 {offsets = [6, 0], sizes = [1, 256], strides = [1, 1]} : vector<9x256xf32> to vector<1x256xf32>
    %88 = vector.broadcast %87 : vector<1x256xf32> to vector<8x256xf32>
    %89 = arith.mulf %86, %88 : vector<8x256xf32>
    %c240_i32_20 = arith.constant 240 : i32
    %90 = tpu.dynamic_rotate %65 by %c240_i32_20 dim 1 : vector<8x256xf32>, i32 -> vector<8x256xf32>
    %91 = vector.extract_strided_slice %2 {offsets = [7, 0], sizes = [1, 256], strides = [1, 1]} : vector<9x256xf32> to vector<1x256xf32>
    %92 = vector.broadcast %91 : vector<1x256xf32> to vector<8x256xf32>
    %93 = arith.mulf %90, %92 : vector<8x256xf32>
    %c239_i32_21 = arith.constant 239 : i32
    %94 = tpu.dynamic_rotate %65 by %c239_i32_21 dim 1 : vector<8x256xf32>, i32 -> vector<8x256xf32>
    %95 = vector.extract_strided_slice %2 {offsets = [8, 0], sizes = [1, 256], strides = [1, 1]} : vector<9x256xf32> to vector<1x256xf32>
    %96 = vector.broadcast %95 : vector<1x256xf32> to vector<8x256xf32>
    %97 = arith.mulf %94, %96 : vector<8x256xf32>
    %98 = tpu.concatenate %69, %73, %77, %81, %65, %85, %89, %93, %97 in 0 : vector<8x256xf32>, vector<8x256xf32>, vector<8x256xf32>, vector<8x256xf32>, vector<8x256xf32>, vector<8x256xf32>, vector<8x256xf32>, vector<8x256xf32>, vector<8x256xf32> -> vector<72x256xf32>
    %99 = tpu.concatenate %63, %98 in 1 : vector<72x256xf32>, vector<72x256xf32> -> vector<72x512xf32>
    %100 = arith.truncf %99 : vector<72x512xf32> to vector<72x512xbf16>
    %c0_22 = arith.constant 0 : index
    %c0_23 = arith.constant 0 : index
    %101 = vector.load %arg4[%c0_22, %c0_23] : memref<8x72xbf16, #tpu.memory_space<vmem>>, vector<8x72xbf16>
    %cst_24 = arith.constant dense<0.000000e+00> : vector<8x512xf32>
    %102 = tpu.matmul %101, %100, %cst_24 {dimension_numbers = #tpu.dot_dimension_numbers<[1], [0], [0], [1], [0, 0, 1, 1], [], []>} : vector<8x72xbf16>, vector<72x512xbf16>, vector<8x512xf32> -> vector<8x512xf32>
    %c0_25 = arith.constant 0 : index
    %c0_26 = arith.constant 0 : index
    %103 = vector.load %arg5[%c0_25, %c0_26] : memref<8x1xf32, #tpu.memory_space<vmem>>, vector<8x1xf32>
    %104 = vector.broadcast %103 : vector<8x1xf32> to vector<8x512xf32>
    %105 = arith.addf %102, %104 : vector<8x512xf32>
    %106 = vector.extract_strided_slice %105 {offsets = [0, 0], sizes = [8, 256], strides = [1, 1]} : vector<8x512xf32> to vector<8x256xf32>
    %c0_27 = arith.constant 0 : index
    %c0_28 = arith.constant 0 : index
    %c0_29 = arith.constant 0 : index
    %107 = vector.load %arg6[%c0_27, %c0_28, %c0_29] : memref<2x8x256xf32, #tpu.memory_space<vmem>>, vector<1x8x256xf32>
    %108 = vector.shape_cast %107 : vector<1x8x256xf32> to vector<8x256xf32>
    %109 = vector.shape_cast %106 : vector<8x256xf32> to vector<1x8x256xf32>
    tpu.vector_store %arg6[%c0_27, %c0_28, %c0_29], %109 {strides = array<i32>} : memref<2x8x256xf32, #tpu.memory_space<vmem>>, vector<1x8x256xf32>,
    %110 = vector.extract_strided_slice %105 {offsets = [0, 256], sizes = [8, 256], strides = [1, 1]} : vector<8x512xf32> to vector<8x256xf32>
    %c1 = arith.constant 1 : index
    %c0_30 = arith.constant 0 : index
    %c0_31 = arith.constant 0 : index
    %111 = vector.load %arg6[%c1, %c0_30, %c0_31] : memref<2x8x256xf32, #tpu.memory_space<vmem>>, vector<1x8x256xf32>
    %112 = vector.shape_cast %111 : vector<1x8x256xf32> to vector<8x256xf32>
    %113 = vector.shape_cast %110 : vector<8x256xf32> to vector<1x8x256xf32>
    tpu.vector_store %arg6[%c1, %c0_30, %c0_31], %113 {strides = array<i32>} : memref<2x8x256xf32, #tpu.memory_space<vmem>>, vector<1x8x256xf32>,
    return
  }
  func.func @transform_0(%arg0: i32) -> (i32, i32, i32) {
    %c0_i32 = arith.constant 0 : i32
    %c0_i32_0 = arith.constant 0 : i32
    %c0_i32_1 = arith.constant 0 : i32
    return %arg0, %c0_i32, %c0_i32_0 : i32, i32, i32
  }
  func.func @transform_1(%arg0: i32) -> (i32, i32, i32) {
    %c0_i32 = arith.constant 0 : i32
    %c0_i32_0 = arith.constant 0 : i32
    %c0_i32_1 = arith.constant 0 : i32
    return %arg0, %c0_i32, %c0_i32_0 : i32, i32, i32
  }
  func.func @transform_2(%arg0: i32) -> (i32, i32) {
    %c0_i32 = arith.constant 0 : i32
    %c0_i32_0 = arith.constant 0 : i32
    %c0_i32_1 = arith.constant 0 : i32
    return %c0_i32, %c0_i32_0 : i32, i32
  }
  func.func @transform_3(%arg0: i32) -> (i32, i32) {
    %c0_i32 = arith.constant 0 : i32
    %c0_i32_0 = arith.constant 0 : i32
    %c0_i32_1 = arith.constant 0 : i32
    return %c0_i32, %c0_i32_0 : i32, i32
  }
  func.func @transform_4(%arg0: i32) -> (i32, i32) {
    %c0_i32 = arith.constant 0 : i32
    %c0_i32_0 = arith.constant 0 : i32
    %c0_i32_1 = arith.constant 0 : i32
    return %c0_i32, %c0_i32_0 : i32, i32
  }
  func.func @transform_5(%arg0: i32) -> (i32, i32, i32) {
    %c0_i32 = arith.constant 0 : i32
    %c0_i32_0 = arith.constant 0 : i32
    %c0_i32_1 = arith.constant 0 : i32
    return %arg0, %c0_i32, %c0_i32_0 : i32, i32, i32
  }
}

</mosaic_0001>

<bundles_post_ra>
// kernel: tpu_custom_call.1
= control target key start
LH: loop header
LB: loop body
LE: loop exit
PB: predicated region body
PF: predicated region fallthrough
CT: control target
= control target key end

     0   :  { %10 = vsyncpa [#allocation3], 0  ;;  %s972_s0 = inlined_call_operand.hbm [shape: f32[2,4,256], index: 0, kind: input, shape index: {}]   ;;  %s973_s1 = inlined_call_operand.hbm [shape: f32[2,4,256], index: 1, kind: input, shape index: {}]   ;;  %s974_s2 = inlined_call_operand.hbm [shape: f32[9,256], index: 2, kind: input, shape index: {}]   ;;  %s975_s3 = inlined_call_operand.vmem [shape: bf16[8,72], index: 3, kind: input, shape index: {}]   ;;  %s976_s4 = inlined_call_operand.vmem [shape: f32[8,1], index: 4, kind: input, shape index: {}]   ;;  %s977_s5 = inlined_call_operand.hbm [shape: f32[2,8,256], index: 5, kind: output, shape index: {}]  }
   0x1   :  { %11 = vsyncpa [#allocation6], 0 }
   0x2   :  { %12 = vsyncpa [#allocation4], 0  ;;  %s676_s18 = smov [#allocation5]   ;;  %s677_s20 = smov [#allocation2]  }
   0x3   :  { %s30_s19 = sshll.u32 %s676_s18, 4  ;;  %s18_s21 = sshll.u32 %s677_s20, 4  ;;  %s31_s19 = int_to_ptr.vmem [resolvable:$true] %s30_s19  ;;  %s723_s21 = int_to_ptr.vmem [resolvable:$true] %s18_s21 }
   0x4   :  { %s582_s24 = scalar_lea.hbm %s973_s1, 256 }
   0x5   :  { %p583_p0 = scmp.ne.s32.totalorder %s973_s1, %s582_s24  ;;  %p586_p1 = scmp.lt.u32.totalorder %s582_s24, %s973_s1 }
   0x7   :  { %p588_p2 = pnand %p586_p1, %p583_p0 }
   0x9   :  { %591 = shalt.err (!%p588_p2)
}
   0xa   :  { %s592_s29 = scalar_lea.vmem %s31_s19, 256  ;;  %p597_p4 = scmp.lt.s32.totalorder %s31_s19, %s31_s19 }
   0xb   :  { %p593_p3 = scmp.ne.s32.totalorder %s31_s19, %s592_s29  ;;  %p598_p5 = scmp.lt.s32.totalorder %s592_s29, %s592_s29 }
   0xd   :  { %p599_p6 = por %p598_p5, %p597_p4 }
   0xf   :  { %p600_p7 = pnand %p599_p6, %p593_p3 }
  0x11   :  { %603 = shalt.err (!%p600_p7)
}
  0x12   :  { %s678_s30 = smov 128   ;;  %s679_s6 = smov 8  }
  0x13   :  { %36 = dma.hbm_to_vmem [thread:$0]  %s973_s1, 256, %s31_s19, [#allocation6], %s678_s30, %s678_s30, %s679_s6  }
  0x14   :  { %s604_s11 = scalar_lea.hbm %s972_s0, 256 }
  0x15   :  { %p605_p8 = scmp.ne.s32.totalorder %s972_s0, %s604_s11  ;;  %p608_p9 = scmp.lt.u32.totalorder %s604_s11, %s972_s0 }
  0x17   :  { %p610_p10 = pnand %p608_p9, %p605_p8 }
  0x19   :  { %613 = shalt.err (!%p610_p10)
}
  0x1a   :  { %s614_s16 = scalar_lea.vmem %s723_s21, 256  ;;  %p619_p12 = scmp.lt.s32.totalorder %s723_s21, %s723_s21 }
  0x1b   :  { %p615_p11 = scmp.ne.s32.totalorder %s723_s21, %s614_s16  ;;  %p620_p13 = scmp.lt.s32.totalorder %s614_s16, %s614_s16 }
  0x1d   :  { %p621_p0 = por %p620_p13, %p619_p12 }
  0x1f   :  { %p622_p1 = pnand %p621_p0, %p615_p11 }
  0x21   :  { %625 = shalt.err (!%p622_p1)
}
  0x22   :  { %24 = dma.hbm_to_vmem [thread:$0]  %s972_s0, 256, %s723_s21, [#allocation3], %s678_s30, %s678_s30, %s679_s6  }
  0x23   :  { %s680_s18 = smov [#allocation7]   ;;  %s626_s23 = scalar_lea.hbm %s974_s2, 512 }
  0x24   :  { %s42_s19 = sshll.u32 %s680_s18, 4  ;;  %p627_p2 = scmp.ne.s32.totalorder %s974_s2, %s626_s23  ;;  %s43_s19 = int_to_ptr.vmem [resolvable:$true] %s42_s19 }
  0x25   :  { %p630_p3 = scmp.lt.u32.totalorder %s626_s23, %s974_s2 }
  0x27   :  { %p632_p4 = pnand %p630_p3, %p627_p2 }
  0x29   :  { %635 = shalt.err (!%p632_p4)
}
  0x2a   :  { %s636_s28 = scalar_lea.vmem %s43_s19, 512  ;;  %p641_p6 = scmp.lt.s32.totalorder %s43_s19, %s43_s19 }
  0x2b   :  { %p637_p5 = scmp.ne.s32.totalorder %s43_s19, %s636_s28  ;;  %p642_p7 = scmp.lt.s32.totalorder %s636_s28, %s636_s28 }
  0x2d   :  { %p643_p8 = por %p642_p7, %p641_p6 }
  0x2f   :  { %p644_p9 = pnand %p643_p8, %p637_p5 }
  0x31   :  { %647 = shalt.err (!%p644_p9)
}
  0x32   :  { %s681_s0 = smov 256   ;;  %s682_s21 = smov 16  }
  0x33   :  { %48 = dma.hbm_to_vmem [thread:$0]  %s974_s2, 512, %s43_s19, [#allocation6], %s681_s0, %s681_s0, %s682_s21  }
  0x34   :  { %670 = dma.done.wait [#allocation3], 256  }
  0x35   :  { %671 = vsyncadd [#allocation3], 4294967040 }
  0x36   :  { %672 = dma.done.wait [#allocation6], 768  }
  0x37   :  { %673 = vsyncadd [#allocation6], 4294966528  ;;  %vm77_vm0 = vcmask 1043456   ;;  %v769_v0 = vld [vmem:[#allocation2] sm:$0xff]  ;;  %v771_v1 = vld [vmem:[#allocation2 + $0x8] sm:$0xff]  ;;  %v96_v12 = vlaneseq  ;;  %s684_s2 = smov 17  }
  0x38   :  { %v73_v2 = vcombine.high %v769_v0, %v769_v0  ;;  %v78_v3 = vsel %vm77_vm0, %v769_v0, 0.0  ;;  %v74_v4 = vcombine.high %v771_v1, %v771_v1  ;;  %v83_v6 = vsel %vm77_vm0, %v771_v1, 0.0  ;;  %v65_v56 = vld [vmem:[#allocation5] sm:$0xff]  ;;  %v66_v59 = vld [vmem:[#allocation5 + $0x8] sm:$0xff]  ;;  %s685_s6 = smov 15   ;;  %s686_s7 = smov 1  }
  0x39   :  { %v683_v10 = vmov 839922192   ;;  %v784_v14 = vshrl.u32 %v96_v12, 7  ;;  %v182_v57 = vcombine.low %v65_v56, %v65_v56  ;;  %v183_v63 = vcombine.low %v66_v59, %v66_v59  ;;  %s687_s8 = smov 127   ;;  %s688_s9 = smov 113  }
  0x3a   :  { %v79_v5 = vsel %vm77_vm0, %v73_v2, 0.0  ;;  %v84_v7 = vsel %vm77_vm0, %v74_v4, 0.0  ;;  %v94_v11 = vunpack.c.l.s4 %v683_v10  ;;  %s689_s10 = smov 112   ;;  %s690_s11 = smov 111   ;;  %v847_v10 = vand.u32 127, %v96_v12 }
  0x3b   :  { %v80_v8 = vadd.f32 %v79_v5, %v78_v3  ;;  %v85_v9 = vadd.f32 %v84_v7, %v83_v6  ;;  %v413_v7 = vld [vmem:[%s976_s4] sm:$0xff]  ;;  %vm419_vm9 = vcmask 588800   ;;  %s692_s15 = smov [#allocation8]  }
  0x3c   :  { %v95_v13 = vunpack.c.0.s8 %v94_v11  ;;  %v201_v11 = vsub.s32 0, %v784_v14  ;;  %vm196_vm1 = vcmp.lt.s32.totalorder %v847_v10, 17  ;;  %vm213_vm2 = vcmp.lt.s32.totalorder %v847_v10, 16 }
  0x3d   :  { %81 = vadd.xlane.f32.xlu0 %v80_v8  ;;  %vm230_vm3 = vcmp.lt.s32.totalorder %v847_v10, 15  ;;  %vm247_vm4 = vcmp.lt.s32.totalorder %v847_v10, 1  ;;  %vm264_vm5 = vcmp.lt.s32.totalorder %v847_v10, 127  ;;  %vm281_vm6 = vcmp.lt.s32.totalorder %v847_v10, 113 }
  0x3e   :  { %v98_v15 = vsub.s32 %v95_v13, %v784_v14  ;;  %v850_v13 = vld [vmem:[#allocation7] sm:$0xff]  ;;  %vm298_vm7 = vcmp.lt.s32.totalorder %v847_v10, 112  ;;  %vm315_vm8 = vcmp.lt.s32.totalorder %v847_v10, 111 }
  0x41   :  { %86 = vadd.xlane.f32.xlu0 %v85_v9 }
  0xca   :  { %v82_v16 = vpop.xlane.xlu0 %81 }
  0xcb   :  { %v89_v17 = vmul.f32 0.00390625, %v82_v16  ;;  %v853_v16 = vld [vmem:[#allocation7 + $0x8] sm:$0xff] }
  0xcc   :  { %v206_v12 = vrot.slane %v853_v16, %v201_v11 }
  0xcd   :  { %v99_v18 = vrot.slane %v89_v17, %v98_v15 }
  0xce   :  { %v87_v19 = vpop.xlane.xlu0 %86 }
  0xcf   :  { %v109_v20 = vsub.f32 %v769_v0, %v99_v18  ;;  %v90_v21 = vmul.f32 0.00390625, %v87_v19  ;;  %v202_v19 = vrot.slane %v850_v13, %v201_v11  ;;  %v269_v11 = vsub.s32 5, %v784_v14 }
  0xd1   :  { %v111_v22 = vmul.f32 %v109_v20, %v109_v20  ;;  %v106_v23 = vrot.slane %v90_v21, %v98_v15 }
  0xd3   :  { %v110_v24 = vsub.f32 %v771_v1, %v106_v23  ;;  %v115_v25 = vcombine.high %v111_v22, %v111_v22  ;;  %v119_v27 = vsel %vm77_vm0, %v111_v22, 0.0 }
  0xd5   :  { %v112_v26 = vmul.f32 %v110_v24, %v110_v24  ;;  %v120_v28 = vsel %vm77_vm0, %v115_v25, 0.0 }
  0xd6   :  { %v121_v29 = vadd.f32 %v120_v28, %v119_v27 }
  0xd7   :  { %v116_v30 = vcombine.high %v112_v26, %v112_v26  ;;  %v124_v31 = vsel %vm77_vm0, %v112_v26, 0.0 }
  0xd8   :  { %122 = vadd.xlane.f32.xlu1 %v121_v29 }
  0xd9   :  { %v125_v32 = vsel %vm77_vm0, %v116_v30, 0.0 }
  0xda   :  { %v126_v33 = vadd.f32 %v125_v32, %v124_v31 }
  0xdc   :  { %127 = vadd.xlane.f32.xlu1 %v126_v33 }
 0x165   :  { %v123_v34 = vpop.xlane.xlu1 %122 }
 0x166   :  { %v130_v35 = vmul.f32 0.003921569, %v123_v34 }
 0x168   :  { %v132_v36 = vadd.f32 8.0, %v130_v35 }
 0x169   :  { %v128_v37 = vpop.xlane.xlu1 %127 }
 0x16a   :  { %v134_v38 = vmul.f32 4.0, %v132_v36  ;;  %v131_v39 = vmul.f32 0.003921569, %v128_v37 }
 0x16c   :  { %v144_v40 = vrot.slane %v134_v38, %v98_v15  ;;  %v133_v41 = vadd.f32 8.0, %v131_v39 }
 0x16e   :  { %570 = vrcp.f32 %v144_v40  ;;  %v135_v42 = vmul.f32 4.0, %v133_v41 }
 0x170   :  { %v151_v43 = vrot.slane %v135_v42, %v98_v15  ;;  %v218_v15 = vsub.s32 1, %v784_v14  ;;  %v235_v42 = vsub.s32 2, %v784_v14 }
 0x172   :  { %572 = vrcp.f32 %v151_v43  ;;  %v219_v20 = vrot.slane %v850_v13, %v218_v15  ;;  %v223_v21 = vrot.slane %v853_v16, %v218_v15  ;;  %v252_v43 = vsub.s32 3, %v784_v14 }
 0x178   :  { %v571_v44 = vpop.eup %570 }
 0x179   :  { %v155_v45 = vmul.f32 %v571_v44, %v111_v22 }
 0x17b   :  { %v158_v46 = vadd.f32 0.5, %v155_v45 }
 0x17c   :  { %v573_v47 = vpop.eup %572 }
 0x17d   :  { %v540_v48 = vmul.f32 -1.442695, %v158_v46  ;;  %v157_v49 = vmul.f32 %v573_v47, %v112_v26 }
 0x17f   :  { %574 = vpow2.f32 %v540_v48  ;;  %v159_v50 = vadd.f32 0.5, %v157_v49 }
 0x181   :  { %v541_v51 = vmul.f32 -1.442695, %v159_v50 }
 0x183   :  { %576 = vpow2.f32 %v541_v51 }
 0x189   :  { %v575_v52 = vpop.eup %574 }
 0x18a   :  { %v166_v53 = vadd.f32 1.0, %v575_v52  ;;  %v236_v52 = vrot.slane %v850_v13, %v235_v42 }
 0x18c   :  { %578 = vrcp.f32 %v166_v53  ;;  %v240_v53 = vrot.slane %v853_v16, %v235_v42 }
 0x18d   :  { %v577_v54 = vpop.eup %576 }
 0x18e   :  { %v167_v55 = vadd.f32 1.0, %v577_v54  ;;  %v253_v54 = vrot.slane %v850_v13, %v252_v43 }
 0x190   :  { %580 = vrcp.f32 %v167_v55  ;;  %v257_v55 = vrot.slane %v853_v16, %v252_v43 }
 0x196   :  { %v579_v58 = vpop.eup %578 }
 0x197   :  { %v172_v60 = vmul.f32 %v579_v58, %v769_v0 }
 0x199   :  { %v795_v61 = vsel %vm77_vm0, %v172_v60, %v182_v57  ;;  %v176_v62 = vcombine.high %v172_v60, %v172_v60 }
 0x19a   :  { %v581_v2 = vpop.eup %580  ;;  %190 = vrot.lane.b32.xlu0 %v795_v61, %s684_s2  ;;  %209 = vrot.lane.b32.xlu1 %v795_v61, %s682_s21 }
 0x19b   :  { %v173_v3 = vmul.f32 %v581_v2, %v771_v1  ;;  %v802_v4 = vsel %vm77_vm0, %v176_v62, %v65_v56  ;;  %v691_v1 = vmov 0  }
 0x19c   :  { %467 = vmatprep.mubr.bf16.mxu0 %v691_v1  ;;  %508 = vmatprep.mubr.bf16.mxu1 %v691_v1 }
 0x19d   :  { %v805_v5 = vsel %vm77_vm0, %v173_v3, %v183_v63  ;;  %v177_v0 = vcombine.high %v173_v3, %v173_v3  ;;  %565 = vset.pattern.permute.xlu0 %v691_v1 }
 0x19e   :  { %192 = vrot.lane.b32.xlu1 %v802_v4, %s684_s2  ;;  %328 = vrot.lane.b32.xlu0 %v805_v5, %s684_s2 }
 0x19f   :  { %v814_v6 = vsel %vm77_vm0, %v177_v0, %v66_v59 }
 0x1a2   :  { %211 = vrot.lane.b32.xlu1 %v802_v4, %s682_s21  ;;  %336 = vrot.lane.b32.xlu0 %v805_v5, %s682_s21 }
 0x1a6   :  { %226 = vrot.lane.b32.xlu0 %v795_v61, %s685_s6  ;;  %330 = vrot.lane.b32.xlu1 %v814_v6, %s684_s2 }
 0x1aa   :  { %243 = vrot.lane.b32.xlu0 %v795_v61, %s686_s7  ;;  %338 = vrot.lane.b32.xlu1 %v814_v6, %s682_s21 }
 0x1ae   :  { %344 = vrot.lane.b32.xlu0 %v805_v5, %s685_s6  ;;  %228 = vrot.lane.b32.xlu1 %v802_v4, %s685_s6 }
 0x1b2   :  { %352 = vrot.lane.b32.xlu0 %v805_v5, %s686_s7  ;;  %245 = vrot.lane.b32.xlu1 %v802_v4, %s686_s7 }
 0x1b6   :  { %260 = vrot.lane.b32.xlu0 %v795_v61, %s687_s8  ;;  %346 = vrot.lane.b32.xlu1 %v814_v6, %s685_s6 }
 0x1ba   :  { %360 = vrot.lane.b32.xlu0 %v805_v5, %s687_s8  ;;  %354 = vrot.lane.b32.xlu1 %v814_v6, %s686_s7 }
 0x1be   :  { %277 = vrot.lane.b32.xlu0 %v795_v61, %s688_s9  ;;  %262 = vrot.lane.b32.xlu1 %v802_v4, %s687_s8 }
 0x1c2   :  { %294 = vrot.lane.b32.xlu0 %v795_v61, %s689_s10  ;;  %362 = vrot.lane.b32.xlu1 %v814_v6, %s687_s8 }
 0x1c6   :  { %368 = vrot.lane.b32.xlu0 %v805_v5, %s688_s9  ;;  %279 = vrot.lane.b32.xlu1 %v802_v4, %s688_s9 }
 0x1ca   :  { %376 = vrot.lane.b32.xlu0 %v805_v5, %s689_s10  ;;  %296 = vrot.lane.b32.xlu1 %v802_v4, %s689_s10 }
 0x1ce   :  { %311 = vrot.lane.b32.xlu0 %v795_v61, %s690_s11  ;;  %370 = vrot.lane.b32.xlu1 %v814_v6, %s688_s9 }
 0x1d2   :  { %384 = vrot.lane.b32.xlu0 %v805_v5, %s690_s11  ;;  %378 = vrot.lane.b32.xlu1 %v814_v6, %s689_s10 }
 0x1d6   :  { %313 = vrot.lane.b32.xlu1 %v802_v4, %s690_s11  ;;  %416 = vperm.xlu0 %565, %v413_v7  }
 0x1da   :  { %386 = vrot.lane.b32.xlu1 %v814_v6, %s690_s11 }
 0x20c   :  { %v210_v8 = vpop.permute.xlu1 %209  ;;  %v191_v9 = vpop.permute.xlu0 %190 }
 0x210   :  { %v193_v17 = vpop.permute.xlu1 %192  ;;  %v329_v18 = vpop.permute.xlu0 %328 }
 0x211   :  { %v197_v22 = vsel %vm196_vm1, %v191_v9, %v193_v17  ;;  %v198_v23 = vsel %vm196_vm1, %v193_v17, %v191_v9 }
 0x212   :  { %v207_v28 = vmul.f32 %v202_v19, %v198_v23  ;;  %v208_v30 = vmul.f32 %v206_v12, %v197_v22  ;;  %v274_v22 = vrot.slane %v853_v16, %v269_v11 }
 0x214   :  { %v212_v24 = vpop.permute.xlu1 %211  ;;  %v337_v25 = vpop.permute.xlu0 %336 }
 0x215   :  { %v214_v26 = vsel %vm213_vm2, %v210_v8, %v212_v24  ;;  %v215_v27 = vsel %vm213_vm2, %v212_v24, %v210_v8 }
 0x216   :  { %v224_v29 = vmul.f32 %v219_v20, %v215_v27  ;;  %v225_v31 = vmul.f32 %v223_v21, %v214_v26 }
 0x218   :  { %v331_v32 = vpop.permute.xlu1 %330  ;;  %v227_v33 = vpop.permute.xlu0 %226  ;;  %v393_v34 = vpack.c.bf16 %v225_v31, %v208_v30  ;;  %v392_v35 = vpack.c.bf16 %v224_v29, %v207_v28 }
 0x219   :  { %v332_v36 = vsel %vm196_vm1, %v329_v18, %v331_v32  ;;  %v333_v37 = vsel %vm196_vm1, %v331_v32, %v329_v18 }
 0x21a   :  { %435 = vmatprep.subr.bf16.mxu0 %v393_v34  ;;  %v334_v44 = vmul.f32 %v333_v37, %v202_v19  ;;  %v335_v46 = vmul.f32 %v332_v36, %v206_v12 }
 0x21b   :  { %436 = vmatpush1.bf16.msra.mxu0 %v392_v35 }
 0x21c   :  { %v339_v38 = vpop.permute.xlu1 %338  ;;  %v244_v39 = vpop.permute.xlu0 %243 }
 0x21d   :  { %v340_v40 = vsel %vm213_vm2, %v337_v25, %v339_v38  ;;  %v341_v41 = vsel %vm213_vm2, %v339_v38, %v337_v25 }
 0x21e   :  { %v342_v45 = vmul.f32 %v341_v41, %v219_v20  ;;  %v343_v47 = vmul.f32 %v340_v40, %v223_v21  ;;  %v270_v21 = vrot.slane %v850_v13, %v269_v11  ;;  %v286_v41 = vsub.s32 6, %v784_v14  ;;  %v543_v11 = vld [vmem:[#allocation7 + $0x18] ss:$0 sm:$0xff] }
 0x220   :  { %v229_v48 = vpop.permute.xlu1 %228  ;;  %v345_v49 = vpop.permute.xlu0 %344  ;;  %v395_v50 = vpack.c.bf16 %v343_v47, %v335_v46  ;;  %v394_v51 = vpack.c.bf16 %v342_v45, %v334_v44  ;;  %v303_v44 = vsub.s32 7, %v784_v14  ;;  %v287_v46 = vrot.slane %v850_v13, %v286_v41 }
 0x221   :  { %v231_v56 = vsel %vm230_vm3, %v227_v33, %v229_v48  ;;  %v232_v57 = vsel %vm230_vm3, %v229_v48, %v227_v33  ;;  %v291_v47 = vrot.slane %v853_v16, %v286_v41 }
 0x222   :  { %476 = vmatprep.subr.bf16.mxu1 %v395_v50  ;;  %v241_v63 = vmul.f32 %v236_v52, %v232_v57  ;;  %v242_v2 = vmul.f32 %v240_v53, %v231_v56  ;;  %v308_v14 = vrot.slane %v853_v16, %v303_v44 }
 0x223   :  { %477 = vmatpush1.bf16.msra.mxu1 %v394_v51 }
 0x224   :  { %v246_v58 = vpop.permute.xlu1 %245  ;;  %v353_v59 = vpop.permute.xlu0 %352 }
 0x225   :  { %v248_v60 = vsel %vm247_vm4, %v244_v39, %v246_v58  ;;  %v249_v62 = vsel %vm247_vm4, %v246_v58, %v244_v39 }
 0x226   :  { %v258_v3 = vmul.f32 %v253_v54, %v249_v62  ;;  %v259_v0 = vmul.f32 %v257_v55, %v248_v60 }
 0x228   :  { %v347_v1 = vpop.permute.xlu1 %346  ;;  %v261_v7 = vpop.permute.xlu0 %260  ;;  %v397_v8 = vpack.c.bf16 %v259_v0, %v242_v2  ;;  %v396_v9 = vpack.c.bf16 %v258_v3, %v241_v63 }
 0x229   :  { %v348_v15 = vsel %vm230_vm3, %v345_v49, %v347_v1  ;;  %v349_v17 = vsel %vm230_vm3, %v347_v1, %v345_v49  ;;  %v304_v49 = vrot.slane %v850_v13, %v303_v44 }
 0x22a   :  { %437 = vmatprep.subr.bf16.mxu0 %v397_v8  ;;  %v350_v23 = vmul.f32 %v349_v17, %v236_v52  ;;  %v351_v24 = vmul.f32 %v348_v15, %v240_v53 }
 0x22b   :  { %438 = vmatpush1.bf16.msra.mxu0 %v396_v9  ;;  %v542_v9 = vld [vmem:[#allocation7 + $0x10] ss:$0 sm:$0xff] }
 0x22c   :  { %v355_v18 = vpop.permute.xlu1 %354  ;;  %v361_v19 = vpop.permute.xlu0 %360 }
 0x22d   :  { %v356_v20 = vsel %vm247_vm4, %v353_v59, %v355_v18  ;;  %v357_v12 = vsel %vm247_vm4, %v355_v18, %v353_v59 }
 0x22e   :  { %v358_v25 = vmul.f32 %v357_v12, %v253_v54  ;;  %v359_v26 = vmul.f32 %v356_v20, %v257_v55 }
 0x230   :  { %v263_v27 = vpop.permute.xlu1 %262  ;;  %v278_v28 = vpop.permute.xlu0 %277  ;;  %v399_v29 = vpack.c.bf16 %v359_v26, %v351_v24  ;;  %v398_v30 = vpack.c.bf16 %v358_v25, %v350_v23 }
 0x231   :  { %v265_v31 = vsel %vm264_vm5, %v261_v7, %v263_v27  ;;  %v266_v32 = vsel %vm264_vm5, %v263_v27, %v261_v7 }
 0x232   :  { %v275_v33 = vmul.f32 %v270_v21, %v265_v31  ;;  %v276_v34 = vmul.f32 %v274_v22, %v266_v32  ;;  %478 = vmatprep.subr.bf16.mxu1 %v399_v29  ;;  %v412_v31 = vld [vmem:[%s975_s3] sm:$0xf]  ;;  %s527_s3 = sshll.u32 %s692_s15, 4  ;;  %s528_s3 = int_to_ptr.vmem [resolvable:$true] %s527_s3 }
 0x233   :  { %479 = vmatpush1.bf16.msra.mxu1 %v398_v30  ;;  %s648_s16 = scalar_lea.vmem %s528_s3, 512  ;;  %p653_p11 = scmp.lt.s32.totalorder %s528_s3, %s528_s3 }
 0x234   :  { %v363_v35 = vpop.permute.xlu1 %362  ;;  %v295_v36 = vpop.permute.xlu0 %294  ;;  %v401_v37 = vpack.c.bf16 %v276_v34, %v802_v4  ;;  %v400_v38 = vpack.c.bf16 %v275_v33, %v795_v61  ;;  %p649_p10 = scmp.ne.s32.totalorder %s528_s3, %s648_s16  ;;  %p654_p12 = scmp.lt.s32.totalorder %s648_s16, %s648_s16 }
 0x235   :  { %v364_v39 = vsel %vm264_vm5, %v361_v19, %v363_v35  ;;  %v365_v40 = vsel %vm264_vm5, %v363_v35, %v361_v19 }
 0x236   :  { %v366_v42 = vmul.f32 %v364_v39, %v270_v21  ;;  %v367_v43 = vmul.f32 %v365_v40, %v274_v22  ;;  %439 = vmatprep.subr.bf16.mxu0 %v401_v37  ;;  %p655_p13 = por %p654_p12, %p653_p11 }
 0x237   :  { %440 = vmatpush1.bf16.msra.mxu0 %v400_v38 }
 0x238   :  { %v280_v45 = vpop.permute.xlu1 %279  ;;  %v403_v4 = vpack.c.bf16 %v367_v43, %v814_v6  ;;  %v402_v61 = vpack.c.bf16 %v366_v42, %v805_v5  ;;  %v369_v48 = vpop.permute.xlu0 %368  ;;  %p656_p0 = pnand %p655_p13, %p649_p10 }
 0x239   :  { %v282_v50 = vsel %vm281_vm6, %v278_v28, %v280_v45  ;;  %v283_v6 = vsel %vm281_vm6, %v280_v45, %v278_v28 }
 0x23a   :  { %480 = vmatprep.subr.bf16.mxu1 %v403_v4  ;;  %v292_v53 = vmul.f32 %v287_v46, %v282_v50  ;;  %v293_v54 = vmul.f32 %v291_v47, %v283_v6 }
 0x23b   :  { %481 = vmatpush1.bf16.msra.mxu1 %v402_v61 }
 0x23c   :  { %v297_v5 = vpop.permute.xlu1 %296  ;;  %v377_v56 = vpop.permute.xlu0 %376 }
 0x23d   :  { %v299_v51 = vsel %vm298_vm7, %v295_v36, %v297_v5  ;;  %v300_v52 = vsel %vm298_vm7, %v297_v5, %v295_v36 }
 0x23e   :  { %v309_v55 = vmul.f32 %v304_v49, %v299_v51  ;;  %v310_v13 = vmul.f32 %v308_v14, %v300_v52 }
 0x240   :  { %v371_v16 = vpop.permute.xlu1 %370  ;;  %v405_v57 = vpack.c.bf16 %v310_v13, %v293_v54  ;;  %v404_v58 = vpack.c.bf16 %v309_v55, %v292_v53  ;;  %v312_v1 = vpop.permute.xlu0 %311 }
 0x241   :  { %v372_v59 = vsel %vm281_vm6, %v369_v48, %v371_v16  ;;  %v373_v60 = vsel %vm281_vm6, %v371_v16, %v369_v48 }
 0x242   :  { %441 = vmatprep.subr.bf16.mxu0 %v405_v57  ;;  %v374_v3 = vmul.f32 %v372_v59, %v287_v46  ;;  %v375_v0 = vmul.f32 %v373_v60, %v291_v47 }
 0x243   :  { %442 = vmatpush1.bf16.msra.mxu0 %v404_v58 }
 0x244   :  { %v379_v62 = vpop.permute.xlu1 %378  ;;  %v385_v22 = vpop.permute.xlu0 %384 }
 0x245   :  { %v380_v63 = vsel %vm298_vm7, %v377_v56, %v379_v62  ;;  %v381_v2 = vsel %vm298_vm7, %v379_v62, %v377_v56 }
 0x246   :  { %v382_v7 = vmul.f32 %v380_v63, %v304_v49  ;;  %v383_v8 = vmul.f32 %v381_v2, %v308_v14 }
 0x248   :  { %v314_v15 = vpop.permute.xlu1 %313  ;;  %v407_v17 = vpack.c.bf16 %v383_v8, %v375_v0  ;;  %v406_v18 = vpack.c.bf16 %v382_v7, %v374_v3 }
 0x249   :  { %v316_v19 = vsel %vm315_vm8, %v312_v1, %v314_v15  ;;  %v317_v20 = vsel %vm315_vm8, %v314_v15, %v312_v1 }
 0x24a   :  { %v326_v12 = vmul.f32 %v542_v9, %v316_v19  ;;  %v327_v21 = vmul.f32 %v543_v11, %v317_v20  ;;  %482 = vmatprep.subr.bf16.mxu1 %v407_v17 }
 0x24b   :  { %483 = vmatpush1.bf16.msra.mxu1 %v406_v18 }
 0x24c   :  { %v408_v23 = vpack.c.bf16 %v326_v12, %v326_v12  ;;  %v409_v24 = vpack.c.bf16 %v327_v21, %v327_v21  ;;  %v387_v25 = vpop.permute.xlu1 %386 }
 0x24d   :  { %v388_v26 = vsel %vm315_vm8, %v385_v22, %v387_v25  ;;  %v389_v27 = vsel %vm315_vm8, %v387_v25, %v385_v22 }
 0x24e   :  { %v390_v28 = vmul.f32 %v542_v9, %v388_v26  ;;  %v391_v29 = vmul.f32 %v543_v11, %v389_v27  ;;  %544 = vmatprep.subr.msk.bf16.mxu0 %vm77_vm0, %v409_v24  ;;  %v424_v30 = vsel %vm77_vm0, %v408_v23, 0 }
 0x24f   :  { %444 = vmatpush1.bf16.msra.mxu0 %v424_v30 }
 0x250   :  { %v410_v32 = vpack.c.bf16 %v390_v28, %v390_v28  ;;  %v411_v33 = vpack.c.bf16 %v391_v29, %v391_v29 }
 0x252   :  { %546 = vmatprep.subr.msk.bf16.mxu1 %vm77_vm0, %v411_v33  ;;  %545 = vmatmul.mubr.msk.bf16.vlgmr.msra.gmra.mrb[0].mxu0 %vm419_vm9, %v412_v31  ;;  %v430_v10 = vsel %vm77_vm0, %v410_v32, 0 }
 0x253   :  { %485 = vmatpush1.bf16.msra.mxu1 %v430_v10 }
 0x255   :  { %v417_v34 = vpop.permute.xlu0 %416 }
 0x256   :  { %547 = vmatmul.mubr.msk.bf16.vlgmr.msra.gmra.mrb[0].mxu1 %vm419_vm9, %v412_v31 }
 0x325   :  { %v469_v35 = vpop.f32.mrb[0].mxu0 }
 0x326   :  { %v471_v36 = vpop.f32.mrb[1].mxu0  ;;  %v470_v37 = vadd.f32 %v469_v35, %v417_v34 }
 0x327   :  { %v473_v38 = vpop.f32.mrb[2].mxu0  ;;  %v472_v39 = vadd.f32 %v471_v36, %v417_v34 }
 0x328   :  { %v474_v40 = vpop.f32.mrb[3].mxu0  ;;  %517 = vst [vmem:[#allocation8] sm:$0xff] %v470_v37 }
 0x329   :  { %v510_v41 = vpop.f32.mrb[0].mxu1  ;;  %518 = vst [vmem:[#allocation8 + $0x8] sm:$0xff] %v472_v39 }
 0x32a   :  { %v511_v42 = vadd.f32 %v510_v41, %v417_v34  ;;  %v512_v43 = vpop.f32.mrb[1].mxu1 }
 0x32b   :  { %v513_v44 = vadd.f32 %v512_v43, %v417_v34  ;;  %v514_v45 = vpop.f32.mrb[2].mxu1 }
 0x32c   :  { %520 = vst [vmem:[#allocation8 + $0x10] sm:$0xff] %v511_v42  ;;  %v515_v4 = vpop.f32.mrb[3].mxu1 }
 0x32d   :  { %521 = vst [vmem:[#allocation8 + $0x18] sm:$0xff] %v513_v44 }
 0x32e   :  { %659 = shalt.err (!%p656_p0)
}
 0x32f   :  { %s660_s18 = scalar_lea.hbm %s977_s5, 512 }
 0x330   :  { %p661_p1 = scmp.ne.s32.totalorder %s977_s5, %s660_s18  ;;  %p664_p2 = scmp.lt.u32.totalorder %s660_s18, %s977_s5 }
 0x332   :  { %p666_p3 = pnand %p664_p2, %p661_p1 }
 0x334   :  { %669 = shalt.err (!%p666_p3)
}
 0x335   :  { %533 = dma.vmem_to_hbm [thread:$0]  %s528_s3, 512, %s977_s5, [#allocation4], %s681_s0, %s681_s0, %s682_s21  }
 0x336   :  { %674 = dma.done.wait [#allocation4], 512  }
 0x337   :  { %675 = vsyncadd [#allocation4], 4294966784 }
 0x338   :  { %537 = vsyncpa [#allocation3], 1 }
 0x339   :  { %538 = vsyncpa [#allocation6], 1 }
 0x33a   :  { %539 = vsyncpa [#allocation4], 1 }

</bundles_post_ra>
